<compile_context>
chip_gen: v7x
topology: tpu7x:2x2x1
jax: 0.10.0
libtpu: 0.0.40
codegen_flags: <defaults>
</compile_context>

<pallas_src>
import functools
import math

import jax
import jax.numpy as jnp
from jax.experimental import pallas as pl
from jax.experimental.pallas import tpu as pltpu


_LANE = 128
_TARGET_BLOCK_BYTES = 4 * 1024 * 1024      # ~4 MiB per block (good on v5e/v6e/v7x)
_VMEM_LIMIT_BYTES = 64 * 1024 * 1024


def _pick_tile(n, cap, align=1):
    """Largest divisor t of n with (t % align == 0 or t == n) and t <= cap;
    if none exists, the smallest such divisor (> cap).  Always valid w.r.t.
    Mosaic's 'multiple of (8,128) or full extent' rule when align is 8/128."""
    cap = max(1, int(cap))
    best_le, best_gt = None, None
    i = 1
    while i * i <= n:
        if n % i == 0:
            for t in (i, n // i):
                if t % align != 0 and t != n:
                    continue
                if t <= cap:
                    if best_le is None or t > best_le:
                        best_le = t
                else:
                    if best_gt is None or t < best_gt:
                        best_gt = t
        i += 1
    return best_le if best_le is not None else best_gt


def _copy_kernel(src_ref, dst_ref):
    # Lane-dense copy of a leftIn tile into the left rows of the folded output.
    dst_ref[...] = src_ref[...]


def _right_pad_kernel(right_ref, out_alias_ref, out_ref, *, dD):
    """Write the depth-padded right half.

    right_ref     : (1, tcr, rD, ts) VMEM  (H/W already padded, H*W folded)
    out_alias_ref : full output in HBM, aliased with call 1's result (unused)
    out_ref       : (1, tcr, D, ts) VMEM
    Leading dD depth slices are zero; the rest is a lane-dense copy.
    """
    del out_alias_ref  # present only to establish the in-place alias
    if dD > 0:
        _, tc, _, ts = out_ref.shape
        out_ref[:, :, :dD, :] = jnp.zeros((1, tc, dD, ts), out_ref.dtype)
        out_ref[:, :, dD:, :] = right_ref[...]
    else:
        out_ref[...] = right_ref[...]


@jax.jit
def unet_pad_cat(left, right):
    """Pallas equivalent of unetPadCat.forward(leftIn, rightIn)."""
    N, Cl, D, H, W = left.shape
    Nr, Cr, rD, rH, rW = right.shape
    assert N == Nr, "batch dims must match"
    assert rD <= D and rH <= H and rW <= W, "rightIn must be no larger than leftIn"
    assert left.dtype == right.dtype, "dtypes must match"
    dD, dH, dW = D - rD, H - rH, W - rW
    C = Cl + Cr
    HW = H * W
    dtype = left.dtype
    itemsize = jnp.dtype(dtype).itemsize
    target_elems = max(_LANE, _TARGET_BLOCK_BYTES // itemsize)
    sub_align = max(8, 32 // itemsize)         # sublane packing for this dtype

    # ---- wrapper pre-pad of rightIn along H/W only (small tensor, one pass) ----
    if dH > 0 or dW > 0:
        right = jnp.pad(right, ((0, 0), (0, 0), (0, 0), (dH, 0), (dW, 0)))
    right_f = right.reshape(N, Cr, rD, HW)     # lane axis = folded H*W

    # ---------- call 1: copy leftIn into rows [0, Cl*D) of folded output ----------
    R1 = Cl * D                                # fold channels+depth -> big divisor pool
    ts1 = _pick_tile(HW, target_elems, _LANE)
    tr1 = _pick_tile(R1, max(sub_align, target_elems // ts1), sub_align)
    if tr1 * ts1 * itemsize > 2 * _TARGET_BLOCK_BYTES:       # bad divisor structure
        ts1 = _pick_tile(HW, max(_LANE, target_elems // tr1), _LANE)
    if N * (R1 // tr1) * (HW // ts1) == 1:                   # keep >=2 points (megacore)
        t2 = _pick_tile(R1, max(sub_align, R1 // 2), sub_align)
        if t2 < R1:
            tr1 = t2
        else:
            t2 = _pick_tile(HW, max(_LANE, HW // 2), _LANE)
            if t2 < HW:
                ts1 = t2

    left_f = left.reshape(N, R1, HW)
    out_f = pl.pallas_call(
        _copy_kernel,
        out_shape=jax.ShapeDtypeStruct((N, C * D, HW), dtype),
        grid=(N, R1 // tr1, HW // ts1),
        in_specs=[pl.BlockSpec((1, tr1, ts1), lambda n, r, s: (n, r, s))],
        out_specs=pl.BlockSpec((1, tr1, ts1), lambda n, r, s: (n, r, s)),
        compiler_params=pltpu.CompilerParams(
            dimension_semantics=("parallel",) * 3,
            vmem_limit_bytes=_VMEM_LIMIT_BYTES),
    )(left_f)

    # ---------- call 2: in-place depth-pad of rightIn into channels [Cl, C) ----------
    # Each block covers full depth D so the dD leading zeros are handled in-block.
    if D * HW * itemsize <= _TARGET_BLOCK_BYTES:
        ts2 = HW
    else:
        ts2 = _pick_tile(HW, max(_LANE, target_elems // D), _LANE)
    # TODO(synk): tcr is still tied to gcd(Cl, Cr); decoupling via a remainder
    # call would help pathological channel counts (Cl == Cr in real U-Nets).
    tcr = _pick_tile(math.gcd(Cl, Cr), max(1, target_elems // (D * ts2)), 1)
    c_off = Cl // tcr

    out_4d = out_f.reshape(N, C, D, HW)        # split of folded axis: free bitcast
    kernel = functools.partial(_right_pad_kernel, dD=dD)
    out = pl.pallas_call(
        kernel,
        out_shape=jax.ShapeDtypeStruct((N, C, D, HW), dtype),
        grid=(N, Cr // tcr, HW // ts2),
        in_specs=[
            pl.BlockSpec((1, tcr, rD, ts2), lambda n, c, s: (n, c, 0, s)),
            # aliased full output stays in HBM: no DMA, never read in the kernel
            pl.BlockSpec(memory_space=pl.ANY),
        ],
        out_specs=pl.BlockSpec((1, tcr, D, ts2),
                               lambda n, c, s: (n, c_off + c, 0, s)),
        input_output_aliases={1: 0},
        compiler_params=pltpu.CompilerParams(
            dimension_semantics=("parallel",) * 3,
            vmem_limit_bytes=_VMEM_LIMIT_BYTES),
    )(right_f, out_4d)

    return out.reshape(N, C, D, H, W)


if __name__ == "__main__":
    key = jax.random.PRNGKey(0)
    k_left, k_right = jax.random.split(key)

    # Typical U-Net skip-connection shapes: encoder (left) slightly larger than
    # the upsampled decoder (right) along every spatial axis.
    left = jax.random.normal(k_left, (2, 4, 8, 16, 16), dtype=jnp.float32)
    right = jax.random.normal(k_right, (2, 4, 6, 12, 12), dtype=jnp.float32)

    out = unet_pad_cat(left, right)
    out = jax.block_until_ready(out)

    # Reference (plain JAX) pad-then-concat.
    dD = left.shape[2] - right.shape[2]
    dH = left.shape[3] - right.shape[3]
    dW = left.shape[4] - right.shape[4]
    right_padded = jnp.pad(
        right, ((0, 0), (0, 0), (dD, 0), (dH, 0), (dW, 0)), constant_values=0.0
    )
    ref = jnp.concatenate([left, right_padded], axis=1)

    assert out.shape == (2, 8, 8, 16, 16)
    assert jnp.allclose(out, ref), "mismatch vs reference pad+concat"

    print("KERNEL_OK")
</pallas_src>

<mosaic_0001>
module attributes {stable_mosaic.version = 11 : i64} {
  func.func @_copy_kernel(%arg0: i32, %arg1: i32, %arg2: i32, %arg3: memref<1x32x256xf32, #tpu.memory_space<vmem>>, %arg4: memref<1x32x256xf32, #tpu.memory_space<vmem>>) attributes {dimension_semantics = [#tpu.dimension_semantics<parallel>, #tpu.dimension_semantics<parallel>, #tpu.dimension_semantics<parallel>], iteration_bounds = array<i64: 2, 1, 1>, scalar_prefetch = 0 : i64, scratch_operands = 0 : i64, tpu.core_type = #tpu.core_type<tc>, window_params = [{transform_indices = @transform_0, window_bounds = array<i64: 1, 32, 256>}, {transform_indices = @transform_1, window_bounds = array<i64: 1, 32, 256>}]} {
    %c0 = arith.constant 0 : index
    %c0_0 = arith.constant 0 : index
    %c0_1 = arith.constant 0 : index
    %0 = vector.load %arg3[%c0, %c0_0, %c0_1] : memref<1x32x256xf32, #tpu.memory_space<vmem>>, vector<1x32x256xf32>
    %c0_2 = arith.constant 0 : index
    %c0_3 = arith.constant 0 : index
    %c0_4 = arith.constant 0 : index
    %1 = vector.load %arg4[%c0_2, %c0_3, %c0_4] : memref<1x32x256xf32, #tpu.memory_space<vmem>>, vector<1x32x256xf32>
    tpu.vector_store %arg4[%c0_2, %c0_3, %c0_4], %0 {strides = array<i32>} : memref<1x32x256xf32, #tpu.memory_space<vmem>>, vector<1x32x256xf32>,
    return
  }
  func.func @transform_0(%arg0: i32, %arg1: i32, %arg2: i32) -> (i32, i32, i32) {
    %c0_i32 = arith.constant 0 : i32
    return %arg0, %arg1, %arg2 : i32, i32, i32
  }
  func.func @transform_1(%arg0: i32, %arg1: i32, %arg2: i32) -> (i32, i32, i32) {
    %c0_i32 = arith.constant 0 : i32
    return %arg0, %arg1, %arg2 : i32, i32, i32
  }
}

module attributes {stable_mosaic.version = 11 : i64} {
  func.func @_right_pad_kernel(%arg0: i32, %arg1: i32, %arg2: i32, %arg3: memref<1x4x6x256xf32, #tpu.memory_space<vmem>>, %arg4: memref<2x8x8x256xf32, #tpu.memory_space<any>>, %arg5: memref<1x4x8x256xf32, #tpu.memory_space<vmem>>) attributes {dimension_semantics = [#tpu.dimension_semantics<parallel>, #tpu.dimension_semantics<parallel>, #tpu.dimension_semantics<parallel>], iteration_bounds = array<i64: 2, 1, 1>, scalar_prefetch = 0 : i64, scratch_operands = 0 : i64, tpu.core_type = #tpu.core_type<tc>, window_params = [{transform_indices = @transform_0, window_bounds = array<i64: 1, 4, 6, 256>}, {}, {transform_indices = @transform_2, window_bounds = array<i64: 1, 4, 8, 256>}]} {
    %cst = arith.constant 0.000000e+00 : f32
    %0 = vector.broadcast %cst : f32 to vector<1x4x2x256xf32>
    %c0 = arith.constant 0 : index
    %c0_0 = arith.constant 0 : index
    %c0_1 = arith.constant 0 : index
    %c0_2 = arith.constant 0 : index
    %1 = vector.load %arg5[%c0, %c0_0, %c0_1, %c0_2] : memref<1x4x8x256xf32, #tpu.memory_space<vmem>>, vector<1x4x2x256xf32>
    tpu.vector_store %arg5[%c0, %c0_0, %c0_1, %c0_2], %0 {strides = array<i32>} : memref<1x4x8x256xf32, #tpu.memory_space<vmem>>, vector<1x4x2x256xf32>,
    %c0_3 = arith.constant 0 : index
    %c0_4 = arith.constant 0 : index
    %c0_5 = arith.constant 0 : index
    %c0_6 = arith.constant 0 : index
    %2 = vector.load %arg3[%c0_3, %c0_4, %c0_5, %c0_6] : memref<1x4x6x256xf32, #tpu.memory_space<vmem>>, vector<1x4x6x256xf32>
    %c0_7 = arith.constant 0 : index
    %c0_8 = arith.constant 0 : index
    %c2 = arith.constant 2 : index
    %c0_9 = arith.constant 0 : index
    %3 = vector.load %arg5[%c0_7, %c0_8, %c2, %c0_9] : memref<1x4x8x256xf32, #tpu.memory_space<vmem>>, vector<1x4x6x256xf32>
    tpu.vector_store %arg5[%c0_7, %c0_8, %c2, %c0_9], %2 {strides = array<i32>} : memref<1x4x8x256xf32, #tpu.memory_space<vmem>>, vector<1x4x6x256xf32>,
    return
  }
  func.func @transform_0(%arg0: i32, %arg1: i32, %arg2: i32) -> (i32, i32, i32, i32) {
    %c0_i32 = arith.constant 0 : i32
    %c0_i32_0 = arith.constant 0 : i32
    return %arg0, %arg1, %c0_i32, %arg2 : i32, i32, i32, i32
  }
  func.func @transform_2(%arg0: i32, %arg1: i32, %arg2: i32) -> (i32, i32, i32, i32) {
    %c1_i32 = arith.constant 1 : i32
    %0 = arith.addi %c1_i32, %arg1 : i32
    %c0_i32 = arith.constant 0 : i32
    %c0_i32_0 = arith.constant 0 : i32
    return %arg0, %0, %c0_i32, %arg2 : i32, i32, i32, i32
  }
}

</mosaic_0001>

<bundles_post_ra>
// kernel: unet_pad_cat.2
= control target key start
LH: loop header
LB: loop body
LE: loop exit
PB: predicated region body
PF: predicated region fallthrough
CT: control target
= control target key end

     0   :  { %6 = vsyncpa [#allocation3], 0  ;;  %s688_s0 = inlined_call_operand.hbm [shape: f32[2,32,256], index: 0, kind: input, shape index: {}]   ;;  %s689_s1 = inlined_call_operand.hbm [shape: f32[2,64,256], index: 1, kind: output, shape index: {}]  }
   0x1   :  { %8 = vsyncpa [#allocation3 + $0x1], 0 }
   0x2   :  { %9 = vsyncpa [#allocation4], 0 }
   0x3   :  { %11 = vsyncpa [#allocation4 + $0x1], 0  ;;  %s513_s6 = smov 0   ;;  %s515_s7 = smov 0  }
   0x4   :  { %s517_s8 = smov 0   ;;  %s519_s9 = smov 0  }
   0x5   :  { %s521_s10 = smov 0   ;;  %s523_s11 = smov 0  }
   0x6 LB: > { %s300_s12 = sadd.s32 4294967295, %s495_s11   ;;  %s301_s13 = sadd.s32 4294967294, %s495_s11   ;;  %s495_s11 = sphi %s523_s11, %s17_s11   ;;  %s491_s10 = sphi %s521_s10, %s704_s10   ;;  %s487_s9 = sphi %s519_s9, %s703_s9   ;;  %s483_s8 = sphi %s517_s8, %s702_s8   ;;  %s479_s7 = sphi %s515_s7, %s701_s7   ;;  %s475_s6 = sphi %s513_s6, %s700_s6  }
   0x7   : > { %s36_s14 = sadd.s32 1, %s491_s10  ;;  %s47_s15 = sadd.s32 1, %s483_s8 }
   0x8   : > { %p38_p0 = scmp.ge.s32.totalorder %s36_s14, 2  ;;  %p54_p1 = scmp.ne.s32.totalorder %s483_s8, %s479_s7 }
   0x9   : > { %p55_p2 = scmp.eq.s32.totalorder %s495_s11, 0  ;;  %p60_p3 = scmp.ne.s32.totalorder %s479_s7, %s475_s6 }
   0xa   : > { %s706_s14 = smov (%p38_p0, %s36_s14), 0  ;;  %p61_p5 = scmp.eq.s32.totalorder %s300_s12, 0 }
   0xb   : > { %p554_p4 = por %p55_p2, %p54_p1  ;;  %s40_s17 = ssub.s32 %s491_s10, %s706_s14 }
   0xc   : > { %p88_p6 = scmp.eq.s32.totalorder %s300_s12, 1  ;;  %p45_p7 = scmp.eq.s32.totalorder %s40_s17, 0 }
   0xd   : > { %p560_p8 = por %p61_p5, %p60_p3  ;;  %p94_p10 = scmp.eq.s32.totalorder %s301_s13, 1 }
   0xe   : > { %p564_p9 = por %p88_p6, %p54_p1  ;;  %p329_p13 = scmp.lt.s32.totalorder %s495_s11, 2 }
   0xf   : > { %s569_s20 = scalar_select %p45_p7, %s483_s8, %s47_s15  }
  0x10   : > { %s693_s19 = scalar_select %p564_p9, 1, 0 }
  0x11   : > { %p571_p11 = por %p94_p10, %p60_p3  ;;  %s114_s22 = sand.u32 1, %s483_s8  }
  0x12   : > { %s304_s23 = sshll.u32 %s114_s22, 6  ;;  %s315_s24 = sshll.u32 %s491_s10, 10 }
  0x13   : > { %s694_s21 = scalar_select %p571_p11, 1, 0 }
  0x14   : > { %s582_s27 = scalar_lea.hbm %s688_s0, %s315_s24  ;;  %s118_s28 = scalar_lea.vmem [#allocation2], %s304_s23 }
  0x15   : > { %s130_s29 = sshll.u32 %s118_s28, 4  ;;  %p588_p0 = pnand %p329_p13, %p554_p4  ;;  %s584_s29 = int_to_ptr.vmem [resolvable:$true] %s130_s29 }
  0x16   : > { %s593_s2 = scalar_lea.sflag [#allocation3], %s114_s22  ;;  %s383_s3 = scalar_lea.hbm %s582_s27, 1024 }
  0x17   : > { %p384_p2 = scmp.ne.s32.totalorder %s582_s27, %s383_s3  ;;  %p385_p3 = pneg %p588_p0 }
  0x18   : > { %s388_s12 = scalar_lea.hbm %s688_s0, 2048  ;;  %p389_p4 = scmp.lt.u32.totalorder %s582_s27, %s688_s0 }
  0x19   : > { %p386_p5 = pnand %p385_p3, %p384_p2  ;;  %p390_p7 = scmp.lt.u32.totalorder %s388_s12, %s383_s3 }
  0x1a   : > { %p392_p13 = scmp.lt.u32.totalorder %s383_s3, %s582_s27 }
  0x1b   : > { %p387_p6 = pneg %p386_p5  ;;  %p391_p10 = por %p390_p7, %p389_p4 }
  0x1d   : > { %p393_p12 = por %p392_p13, %p391_p10 }
  0x1f   : > { %p394_p1 = pnand %p393_p12, %p387_p6 }
  0x21   : > { %397 = shalt.err (!%p394_p1)
}
  0x22   : > { %s398_s16 = scalar_lea.vmem %s584_s29, 1024  ;;  %s497_s17 = smov [#allocation2]  }
  0x23   : > { %p399_p2 = scmp.ne.s32.totalorder %s584_s29, %s398_s16  ;;  %s403_s22 = sshll.u32 %s497_s17, 4  ;;  %s404_s22 = int_to_ptr.vmem [resolvable:$false] %s403_s22 }
  0x24   : > { %s405_s23 = scalar_lea.vmem %s404_s22, 2048  ;;  %p406_p9 = scmp.lt.s32.totalorder %s584_s29, %s404_s22 }
  0x25   : > { %p401_p5 = pnand %p399_p2, %p385_p3  ;;  %p407_p4 = scmp.lt.s32.totalorder %s405_s23, %s398_s16 }
  0x27   : > { %p402_p11 = pneg %p401_p5  ;;  %p408_p7 = por %p407_p4, %p406_p9 }
  0x29   : > { %p409_p10 = pnand %p408_p7, %p402_p11 }
  0x2b   : > { %412 = shalt.err (!%p409_p10)
}
  0x2c   : > { %s498_s24 = smov 256   ;;  %s499_s25 = smov 16  }
  0x2d   : > { %324 = dma.hbm_to_vmem [thread:$0]  (!%p588_p0), %s582_s27, 1024, %s584_s29, %s593_s2, %s498_s24, %s498_s24, %s499_s25  }
  0x2e   : > { %p138_p12 = scmp.lt.s32.totalorder %s495_s11, 3  ;;  %p696_p1 = scmp.ge.s32.totalorder %s495_s11, 1 }
  0x30   : > { %p139_p3 = pnand %p696_p1, %p138_p12 }
  0x31   : > { %s625_s26 = sand.u32 (!%p139_p3), 1, %s479_s7  }
  0x32   : > { %142 = sbr.rel (%p139_p3) target bundleno = 85 (0x55), region = 24  ;;  %s308_s28 = sshll.u32 (!%p139_p3), %s625_s26, 6 }
  0x33   : > { %s145_s3 = scalar_lea.sflag (!%p139_p3), [#allocation3], %s625_s26  ;;  %s148_s4 = scalar_lea.vmem (!%p139_p3), [#allocation2], %s308_s28 }
  0x39   : > { %466 = dma.done.wait (%p560_p8), %s145_s3, 1024  }
  0x3a   : > { %468 = vsyncadd (%p560_p8), %s145_s3, 4294966272  ;;  %s166_s27 = scalar_lea.vmem [#allocation5], %s308_s28  ;;  %s316_s30 = sshll.u32 %s487_s9, 11  ;;  %v171_v0 = vld [vmem:[%s148_s4] sm:$0xff]  ;;  %v172_v1 = vld [vmem:[%s148_s4 + $0x8] sm:$0xff] }
  0x3b   : > { %s206_s29 = sshll.u32 %s166_s27, 4  ;;  %v173_v2 = vld [vmem:[%s148_s4 + $0x10] sm:$0xff]  ;;  %s639_s12 = scalar_lea.hbm %s689_s1, %s316_s30  ;;  %179 = vst [vmem:[%s166_s27] sm:$0xff] %v171_v0  ;;  %180 = vst [vmem:[%s166_s27 + $0x8] sm:$0xff] %v172_v1  ;;  %v174_v3 = vld [vmem:[%s148_s4 + $0x18] sm:$0xff]  ;;  %s634_s29 = int_to_ptr.vmem [resolvable:$true] %s206_s29 }
  0x3c   : > { %181 = vst [vmem:[%s166_s27 + $0x10] sm:$0xff] %v173_v2  ;;  %v175_v4 = vld [vmem:[%s148_s4 + $0x20] sm:$0xff]  ;;  %v176_v5 = vld [vmem:[%s148_s4 + $0x28] sm:$0xff]  ;;  %182 = vst [vmem:[%s166_s27 + $0x18] sm:$0xff] %v174_v3  ;;  %s188_s9 = scalar_lea.sflag [#allocation4], %s625_s26  ;;  %s413_s18 = scalar_lea.vmem %s634_s29, 1024 }
  0x3d   : > { %183 = vst [vmem:[%s166_s27 + $0x20] sm:$0xff] %v175_v4  ;;  %184 = vst [vmem:[%s166_s27 + $0x28] sm:$0xff] %v176_v5  ;;  %v177_v6 = vld [vmem:[%s148_s4 + $0x30] sm:$0xff]  ;;  %v178_v7 = vld [vmem:[%s148_s4 + $0x38] sm:$0xff]  ;;  %p414_p8 = scmp.ne.s32.totalorder %s634_s29, %s413_s18  ;;  %p697_p9 = scmp.ne.s32.totalorder %s693_s19, 0 }
  0x3e   : > { %185 = vst [vmem:[%s166_s27 + $0x30] sm:$0xff] %v177_v6  ;;  %186 = vst [vmem:[%s166_s27 + $0x38] sm:$0xff] %v178_v7  ;;  %s500_s13 = smov [#allocation5]  }
  0x3f   : > { %p415_p11 = pnand %p414_p8, %p697_p9  ;;  %s417_s15 = sshll.u32 %s500_s13, 4  ;;  %s418_s15 = int_to_ptr.vmem [resolvable:$false] %s417_s15 }
  0x40   : > { %s419_s16 = scalar_lea.vmem %s418_s15, 2048  ;;  %p420_p6 = scmp.lt.s32.totalorder %s634_s29, %s418_s15 }
  0x41   : > { %p416_p0 = pneg %p415_p11  ;;  %p421_p13 = scmp.lt.s32.totalorder %s419_s16, %s413_s18 }
  0x43   : > { %p422_p2 = por %p421_p13, %p420_p6 }
  0x45   : > { %p423_p5 = pnand %p422_p2, %p416_p0 }
  0x47   : > { %426 = shalt.err (!%p423_p5)
}
  0x48   : > { %s427_s17 = scalar_lea.hbm %s639_s12, 1024  ;;  %s431_s24 = scalar_lea.hbm %s689_s1, 4096 }
  0x49   : > { %p428_p4 = scmp.ne.s32.totalorder %s639_s12, %s427_s17  ;;  %p432_p12 = scmp.lt.u32.totalorder %s639_s12, %s689_s1 }
  0x4a   : > { %p433_p1 = scmp.lt.u32.totalorder %s431_s24, %s427_s17  ;;  %p435_p8 = scmp.lt.u32.totalorder %s427_s17, %s639_s12 }
  0x4b   : > { %p429_p7 = pnand %p428_p4, %p697_p9 }
  0x4c   : > { %p434_p3 = por %p433_p1, %p432_p12 }
  0x4d   : > { %p430_p10 = pneg %p429_p7 }
  0x4e   : > { %p436_p11 = por %p435_p8, %p434_p3 }
  0x50   : > { %p437_p0 = pnand %p436_p11, %p430_p10 }
  0x52   : > { %440 = shalt.err (!%p437_p0)
}
  0x53   : > { %s501_s3 = smov 256   ;;  %s502_s4 = smov 16  }
  0x54   : > { %319 = dma.vmem_to_hbm [thread:$0]  (%p697_p9), %s634_s29, 1024, %s639_s12, %s188_s9, %s501_s3, %s501_s3, %s502_s4  }
  0x55 PF: > { %s221_s27 = sand.u32 1, %s475_s6   ;;  %p698_p6 = scmp.ne.s32.totalorder %s694_s21, 0 }
  0x56   : > { %p699_p13 = scmp.ge.s32.totalorder %s495_s11, 2  ;;  %s222_s30 = scalar_lea.sflag [#allocation4], %s221_s27 }
  0x58   : > { %p326_p2 = pnand %p699_p13, %p698_p6 }
  0x5a   : > { %470 = dma.done.wait (!%p326_p2), %s222_s30, 1024  }
  0x5b   : > { %472 = vsyncadd (!%p326_p2), %s222_s30, 4294966272  ;;  %s17_s11 = sadd.s32 1, %s495_s11   ;;  %s700_s6 = smov %s479_s7 }
  0x5c   : > { %p14_p5 = scmp.ge.s32.totalorder %s17_s11, 4   ;;  %s701_s7 = smov %s483_s8 }
  0x5d   : > { %s702_s8 = smov %s569_s20  ;;  %s703_s9 = smov %s491_s10 }
  0x5e   : > { %s704_s10 = smov %s706_s14  ;;  %16 = sbr.rel (!%p14_p5) target bundleno = 6 (0x6), region = 69 }
  0x65   :  { %227 = vsyncpa [#allocation3], 1 }
  0x66   :  { %229 = vsyncpa [#allocation3 + $0x1], 1 }
  0x67   :  { %230 = vsyncpa [#allocation4], 1 }
  0x68   :  { %232 = vsyncpa [#allocation4 + $0x1], 1 }

// kernel: unet_pad_cat.3
= control target key start
LH: loop header
LB: loop body
LE: loop exit
PB: predicated region body
PF: predicated region fallthrough
CT: control target
= control target key end

     0   :  { %7 = vsyncpa [#allocation3], 0  ;;  %s766_s0 = inlined_call_operand.hbm [shape: f32[2,4,6,256], index: 0, kind: input, shape index: {}]   ;;  %s767_s1 = inlined_call_operand.hbm [shape: f32[2,8,8,256], index: 1, kind: input, shape index: {}, may-alias: {1,2}]   ;;  %s768_s2 = inlined_call_operand.hbm [shape: f32[2,8,8,256], index: 2, kind: output, shape index: {}, may-alias: {1,2}]  }
   0x1   :  { %9 = vsyncpa [#allocation3 + $0x1], 0 }
   0x2   :  { %10 = vsyncpa [#allocation4], 0 }
   0x3   :  { %12 = vsyncpa [#allocation4 + $0x1], 0  ;;  %s559_s9 = smov 0   ;;  %s561_s10 = smov 0  }
   0x4   :  { %s563_s11 = smov 0   ;;  %s565_s12 = smov 0  }
   0x5   :  { %s567_s13 = smov 0   ;;  %s569_s14 = smov 0  }
   0x6 LB: > { %s338_s1 = sadd.s32 4294967295, %s535_s14   ;;  %s339_s15 = sadd.s32 4294967294, %s535_s14   ;;  %s535_s14 = sphi %s569_s14, %s18_s14   ;;  %s531_s13 = sphi %s567_s13, %s783_s13   ;;  %s527_s12 = sphi %s565_s12, %s782_s12   ;;  %s523_s11 = sphi %s563_s11, %s781_s11   ;;  %s519_s10 = sphi %s561_s10, %s780_s10   ;;  %s515_s9 = sphi %s559_s9, %s779_s9  }
   0x7   : > { %s37_s16 = sadd.s32 1, %s531_s13  ;;  %s48_s17 = sadd.s32 1, %s523_s11 }
   0x8   : > { %p39_p0 = scmp.ge.s32.totalorder %s37_s16, 2  ;;  %p55_p1 = scmp.ne.s32.totalorder %s523_s11, %s519_s10 }
   0x9   : > { %p56_p2 = scmp.eq.s32.totalorder %s535_s14, 0  ;;  %p61_p3 = scmp.ne.s32.totalorder %s519_s10, %s515_s9 }
   0xa   : > { %s785_s16 = smov (%p39_p0, %s37_s16), 0  ;;  %p62_p5 = scmp.eq.s32.totalorder %s338_s1, 0 }
   0xb   : > { %p600_p4 = por %p56_p2, %p55_p1  ;;  %s41_s19 = ssub.s32 %s531_s13, %s785_s16 }
   0xc   : > { %p91_p6 = scmp.eq.s32.totalorder %s338_s1, 1  ;;  %p46_p7 = scmp.eq.s32.totalorder %s41_s19, 0 }
   0xd   : > { %p606_p8 = por %p62_p5, %p61_p3  ;;  %p97_p10 = scmp.eq.s32.totalorder %s339_s15, 1 }
   0xe   : > { %p610_p9 = por %p91_p6, %p55_p1  ;;  %p367_p13 = scmp.lt.s32.totalorder %s535_s14, 2 }
   0xf   : > { %s615_s22 = scalar_select %p46_p7, %s523_s11, %s48_s17  }
  0x10   : > { %s772_s21 = scalar_select %p610_p9, 1, 0 }
  0x11   : > { %p617_p11 = por %p97_p10, %p61_p3  ;;  %s117_s24 = sand.u32 1, %s523_s11  }
  0x12   : > { %s342_s25 = sshll.u32 %s117_s24, 6  ;;  %s353_s26 = sshll.u32 %s531_s13, 10 }
  0x13   : > { %s773_s23 = scalar_select %p617_p11, 1, 0 }
  0x14   : > { %s628_s29 = scalar_lea.hbm %s766_s0, %s353_s26  ;;  %s121_s30 = scalar_lea.vmem [#allocation2], %s342_s25 }
  0x15   : > { %s133_s3 = sshll.u32 %s121_s30, 4  ;;  %p634_p0 = pnand %p367_p13, %p600_p4  ;;  %s630_s3 = int_to_ptr.vmem [resolvable:$true] %s133_s3 }
  0x16   : > { %s639_s5 = scalar_lea.sflag [#allocation3], %s117_s24  ;;  %s422_s6 = scalar_lea.hbm %s628_s29, 1024 }
  0x17   : > { %p423_p2 = scmp.ne.s32.totalorder %s628_s29, %s422_s6  ;;  %p424_p3 = pneg %p634_p0 }
  0x18   : > { %s427_s1 = scalar_lea.hbm %s766_s0, 2048  ;;  %p428_p4 = scmp.lt.u32.totalorder %s628_s29, %s766_s0 }
  0x19   : > { %p425_p5 = pnand %p424_p3, %p423_p2  ;;  %p429_p7 = scmp.lt.u32.totalorder %s427_s1, %s422_s6 }
  0x1a   : > { %p431_p13 = scmp.lt.u32.totalorder %s422_s6, %s628_s29 }
  0x1b   : > { %p426_p6 = pneg %p425_p5  ;;  %p430_p10 = por %p429_p7, %p428_p4 }
  0x1d   : > { %p432_p12 = por %p431_p13, %p430_p10 }
  0x1f   : > { %p433_p1 = pnand %p432_p12, %p426_p6 }
  0x21   : > { %436 = shalt.err (!%p433_p1)
}
  0x22   : > { %s437_s18 = scalar_lea.vmem %s630_s3, 1024  ;;  %s537_s19 = smov [#allocation2]  }
  0x23   : > { %p438_p2 = scmp.ne.s32.totalorder %s630_s3, %s437_s18  ;;  %s442_s24 = sshll.u32 %s537_s19, 4  ;;  %s443_s24 = int_to_ptr.vmem [resolvable:$false] %s442_s24 }
  0x24   : > { %s444_s25 = scalar_lea.vmem %s443_s24, 2048  ;;  %p445_p9 = scmp.lt.s32.totalorder %s630_s3, %s443_s24 }
  0x25   : > { %p440_p5 = pnand %p438_p2, %p424_p3  ;;  %p446_p4 = scmp.lt.s32.totalorder %s444_s25, %s437_s18 }
  0x27   : > { %p441_p11 = pneg %p440_p5  ;;  %p447_p7 = por %p446_p4, %p445_p9 }
  0x29   : > { %p448_p10 = pnand %p447_p7, %p441_p11 }
  0x2b   : > { %451 = shalt.err (!%p448_p10)
}
  0x2c   : > { %s538_s26 = smov 256   ;;  %s539_s27 = smov 16  }
  0x2d   : > { %362 = dma.hbm_to_vmem [thread:$0]  (!%p634_p0), %s628_s29, 1024, %s630_s3, %s639_s5, %s538_s26, %s538_s26, %s539_s27  }
  0x2e   : > { %p141_p12 = scmp.lt.s32.totalorder %s535_s14, 3  ;;  %p775_p1 = scmp.ge.s32.totalorder %s535_s14, 1 }
  0x30   : > { %p142_p3 = pnand %p775_p1, %p141_p12 }
  0x31   : > { %s671_s28 = sand.u32 (!%p142_p3), 1, %s519_s10  }
  0x32   : > { %145 = sbr.rel (%p142_p3) target bundleno = 92 (0x5c), region = 24  ;;  %s346_s30 = sshll.u32 (!%p142_p3), %s671_s28, 6 }
  0x33   : > { %s148_s6 = scalar_lea.sflag (!%p142_p3), [#allocation3], %s671_s28  ;;  %s675_s7 = scalar_lea.vmem (!%p142_p3), [#allocation2], %s346_s30 }
  0x39   : > { %506 = dma.done.wait (%p606_p8), %s148_s6, 1024  }
  0x3a   : > { %508 = vsyncadd (%p606_p8), %s148_s6, 4294966272  ;;  %s681_s29 = scalar_lea.vmem [#allocation5], %s346_s30  ;;  %v540_v0 = vmov 0.0   ;;  %s354_s20 = sshll.u32 %s527_s12, 11  ;;  %v183_v1 = vld [vmem:[%s675_s7] sm:$0x3f] }
  0x3b   : > { %175 = vst [vmem:[%s681_s29] sm:$0x3] %v540_v0  ;;  %176 = vst [vmem:[%s681_s29 + $0x8] sm:$0x3] %v540_v0  ;;  %s695_s5 = scalar_lea.hbm %s768_s2, %s354_s20  ;;  %s243_s8 = sshll.u32 %s681_s29, 4  ;;  %v184_v2 = vld [vmem:[%s675_s7 + $0x8] sm:$0x3f]  ;;  %s712_s8 = int_to_ptr.vmem [resolvable:$true] %s243_s8 }
  0x3c   : > { %177 = vst [vmem:[%s681_s29 + $0x10] sm:$0x3] %v540_v0  ;;  %178 = vst [vmem:[%s681_s29 + $0x18] sm:$0x3] %v540_v0  ;;  %v185_v3 = vld [vmem:[%s675_s7 + $0x10] sm:$0x3f] }
  0x3d   : > { %179 = vst [vmem:[%s681_s29 + $0x20] sm:$0x3] %v540_v0  ;;  %180 = vst [vmem:[%s681_s29 + $0x28] sm:$0x3] %v540_v0  ;;  %v199_v4 = vrot.slane %v183_v1, 6  ;;  %v200_v5 = vrot.slane %v184_v2, 6 }
  0x3e   : > { %181 = vst [vmem:[%s681_s29 + $0x30] sm:$0x3] %v540_v0  ;;  %182 = vst [vmem:[%s681_s29 + $0x38] sm:$0x3] %v540_v0  ;;  %v201_v6 = vrot.slane %v185_v3, 6  ;;  %s705_s12 = scalar_lea.hbm %s695_s5, 1024 }
  0x3f   : > { %v186_v7 = vld [vmem:[%s675_s7 + $0x18] sm:$0x3f]  ;;  %v187_v9 = vld [vmem:[%s675_s7 + $0x20] sm:$0x3f]  ;;  %v188_v10 = vld [vmem:[%s675_s7 + $0x28] sm:$0x3f] }
  0x40   : > { %v202_v8 = vrot.slane %v186_v7, 6  ;;  %215 = vst [vmem:[%s681_s29] sm:$0xfc] %v199_v4  ;;  %216 = vst [vmem:[%s681_s29 + $0x8] sm:$0xfc] %v200_v5  ;;  %v203_v11 = vrot.slane %v187_v9, 6  ;;  %v204_v12 = vrot.slane %v188_v10, 6 }
  0x41   : > { %217 = vst [vmem:[%s681_s29 + $0x10] sm:$0xfc] %v201_v6  ;;  %v189_v13 = vld [vmem:[%s675_s7 + $0x30] sm:$0x3f]  ;;  %v190_v14 = vld [vmem:[%s675_s7 + $0x38] sm:$0x3f] }
  0x42   : > { %218 = vst [vmem:[%s681_s29 + $0x18] sm:$0xfc] %v202_v8  ;;  %v205_v15 = vrot.slane %v189_v13, 6  ;;  %v206_v16 = vrot.slane %v190_v14, 6  ;;  %219 = vst [vmem:[%s681_s29 + $0x20] sm:$0xfc] %v203_v11 }
  0x43   : > { %220 = vst [vmem:[%s681_s29 + $0x28] sm:$0xfc] %v204_v12  ;;  %s224_s1 = scalar_lea.sflag [#allocation4], %s671_s28  ;;  %s452_s15 = scalar_lea.vmem %s712_s8, 1024 }
  0x44   : > { %221 = vst [vmem:[%s681_s29 + $0x30] sm:$0xfc] %v205_v15  ;;  %222 = vst [vmem:[%s681_s29 + $0x38] sm:$0xfc] %v206_v16  ;;  %p453_p8 = scmp.ne.s32.totalorder %s712_s8, %s452_s15  ;;  %p776_p9 = scmp.ne.s32.totalorder %s772_s21, 0 }
  0x45   : > { %s541_s17 = smov [#allocation5]  }
  0x46   : > { %p454_p11 = pnand %p453_p8, %p776_p9  ;;  %s456_s18 = sshll.u32 %s541_s17, 4  ;;  %s457_s18 = int_to_ptr.vmem [resolvable:$false] %s456_s18 }
  0x47   : > { %s458_s19 = scalar_lea.vmem %s457_s18, 2048  ;;  %p459_p6 = scmp.lt.s32.totalorder %s712_s8, %s457_s18 }
  0x48   : > { %p455_p0 = pneg %p454_p11  ;;  %p460_p13 = scmp.lt.s32.totalorder %s458_s19, %s452_s15 }
  0x4a   : > { %p461_p2 = por %p460_p13, %p459_p6 }
  0x4c   : > { %p462_p5 = pnand %p461_p2, %p455_p0 }
  0x4e   : > { %465 = shalt.err (!%p462_p5)
}
  0x4f   : > { %s480_s24 = scalar_lea.hbm %s695_s5, 2048  ;;  %s470_s27 = scalar_lea.hbm %s768_s2, 4096 }
  0x50   : > { %p467_p4 = scmp.ne.s32.totalorder %s705_s12, %s480_s24  ;;  %p471_p12 = scmp.lt.u32.totalorder %s705_s12, %s768_s2 }
  0x51   : > { %p472_p1 = scmp.lt.u32.totalorder %s470_s27, %s480_s24  ;;  %p474_p8 = scmp.lt.u32.totalorder %s480_s24, %s705_s12 }
  0x52   : > { %p468_p7 = pnand %p467_p4, %p776_p9 }
  0x53   : > { %p473_p3 = por %p472_p1, %p471_p12 }
  0x54   : > { %p469_p10 = pneg %p468_p7 }
  0x55   : > { %p475_p11 = por %p474_p8, %p473_p3 }
  0x57   : > { %p476_p0 = pnand %p475_p11, %p469_p10 }
  0x59   : > { %479 = shalt.err (!%p476_p0)
}
  0x5a   : > { %s542_s7 = smov 256   ;;  %s543_s29 = smov 16  }
  0x5b   : > { %357 = dma.vmem_to_hbm [thread:$0]  (%p776_p9), %s712_s8, 1024, %s705_s12, %s224_s1, %s542_s7, %s542_s7, %s543_s29  }
  0x5c PF: > { %s258_s20 = sand.u32 1, %s515_s9   ;;  %p777_p6 = scmp.ne.s32.totalorder %s773_s23, 0 }
  0x5d   : > { %p778_p13 = scmp.ge.s32.totalorder %s535_s14, 2  ;;  %s259_s3 = scalar_lea.sflag [#allocation4], %s258_s20 }
  0x5f   : > { %p364_p2 = pnand %p778_p13, %p777_p6 }
  0x61   : > { %510 = dma.done.wait (!%p364_p2), %s259_s3, 1024  }
  0x62   : > { %512 = vsyncadd (!%p364_p2), %s259_s3, 4294966272  ;;  %s18_s14 = sadd.s32 1, %s535_s14   ;;  %s779_s9 = smov %s519_s10 }
  0x63   : > { %p15_p5 = scmp.ge.s32.totalorder %s18_s14, 4   ;;  %s780_s10 = smov %s523_s11 }
  0x64   : > { %s781_s11 = smov %s615_s22  ;;  %s782_s12 = smov %s531_s13 }
  0x65   : > { %s783_s13 = smov %s785_s16  ;;  %17 = sbr.rel (!%p15_p5) target bundleno = 6 (0x6), region = 69 }
  0x6c   :  { %264 = vsyncpa [#allocation3], 1 }
  0x6d   :  { %266 = vsyncpa [#allocation3 + $0x1], 1 }
  0x6e   :  { %267 = vsyncpa [#allocation4], 1 }
  0x6f   :  { %269 = vsyncpa [#allocation4 + $0x1], 1 }

</bundles_post_ra>
